<compile_context>
chip_gen: v7x
topology: tpu7x:2x2x1
jax: 0.10.0
libtpu: 0.0.40
codegen_flags: <defaults>
</compile_context>

<pallas_src>
import functools

import jax
import jax.numpy as jnp
from jax.experimental import pallas as pl
from jax.experimental.pallas import tpu as pltpu

EPS = 1e-6


def _upsilon_kernel(u_ref, i_ref, o_ref, *, eps):
    # u_ref, i_ref: (TB, C, TL) tiles; o_ref: (TB, 1, TL).
    u = u_ref[...].astype(jnp.float32)
    v = i_ref[...].astype(jnp.float32)
    # Sum of squares over the channel (sublane) axis -> (TB, 1, TL).  VPU only.
    su = jnp.sum(u * u, axis=1, keepdims=True)
    si = jnp.sum(v * v, axis=1, keepdims=True)
    # Separate sqrts for exact parity with the reference (avoids overflow of
    # su*si for very large activations).
    prod = jnp.sqrt(su) * jnp.sqrt(si)
    o_ref[...] = jnp.maximum(prod, eps).astype(o_ref.dtype)


def _round_up(x, m):
    return ((x + m - 1) // m) * m


def _sublane_pack(itemsize):
    # Sub-32-bit dtypes pack along sublanes: f32 -> 8 rows/vreg, bf16 -> 16, i8 -> 32.
    return {4: 8, 2: 16, 1: 32}.get(int(itemsize), 8)


def _vmem_capacity_bytes():
    try:
        cap = getattr(pltpu.get_tpu_info(), "vmem_capacity_bytes", None)
        if cap:
            return int(cap)
    except Exception:
        pass
    return 64 * 1024 * 1024  # conservative fallback: v7x per-TensorCore VMEM


def _block_footprint_bytes(tb, c_pad, tl, itemsize):
    """Total VMEM buffer footprint for one grid configuration.

    2 inputs x 2 pipeline buffers, each (tb, c_pad, tl) at `itemsize`, plus
    2 output buffers of (tb, 8, tl) f32 (the 1-row output block sublane-pads
    to 8 rows).
    """
    return 4 * tb * c_pad * tl * itemsize + 2 * tb * 8 * tl * 4


def _choose_tiles(B, C, L, itemsize):
    """Pick (tb, tl, vmem_limit_bytes) with double-buffer-aware accounting."""
    c_pad = _round_up(max(C, 1), _sublane_pack(itemsize))
    phys = _vmem_capacity_bytes()
    budget = phys // 2  # total buffer budget (all pipeline buffers together)

    # --- lane tile: biggest 128-multiple (or full L) that fits the budget.
    if L <= 128:
        tl = L
    else:
        per_lane = 4 * c_pad * itemsize + 2 * 8 * 4  # footprint bytes per lane (tb=1)
        max_tl = max(128, (budget // per_lane) // 128 * 128)
        tl = int(min((L // 128) * 128, max_tl))

    # --- batch tile: for small L, make each grid step move >= ~1 MiB of input.
    target_step_bytes = 1 << 20
    per_step_in = 2 * C * tl * itemsize
    tb = 1
    if B > 1 and per_step_in < target_step_bytes:
        tb = min(B, max(1, target_step_bytes // max(1, per_step_in)))
        unit = _block_footprint_bytes(1, c_pad, tl, itemsize)
        tb = max(1, min(tb, budget // max(1, unit)))

    # --- guarantee >= 2 grid steps whenever possible (v7x has 2 TensorCores).
    if pl.cdiv(B, tb) * pl.cdiv(L, tl) < 2:
        if B >= 2:
            tb = -(-B // 2)                      # ceil(B/2) -> 2 batch steps
        elif L >= 256:
            tl = _round_up(-(-L // 2), 128)      # halve the lane tile

    footprint = _block_footprint_bytes(tb, c_pad, tl, itemsize)
    vmem_limit = int(footprint * 1.25) + (1 << 20)
    vmem_limit = max(4 << 20, min(vmem_limit, int(phys * 0.9)))
    return int(tb), int(tl), int(vmem_limit)


def upsilon_norm(u, i, *, eps=EPS):
    """u, i: NCHW arrays of identical shape (B, C, H, W) -> (B, 1, H, W) f32."""
    assert u.shape == i.shape
    B, C, H, W = u.shape
    L = H * W

    # Native-layout reshape (no data movement).
    u3 = u.reshape(B, C, L)
    i3 = i.reshape(B, C, L)

    itemsize = jnp.dtype(u.dtype).itemsize
    tb, tl, vmem_limit = _choose_tiles(B, C, L, itemsize)
    grid = (pl.cdiv(B, tb), pl.cdiv(L, tl))

    cost = pl.CostEstimate(
        flops=4 * B * C * L + 2 * B * L,
        transcendentals=2 * B * L,
        bytes_accessed=2 * B * C * L * itemsize + B * L * 4,
    )

    out_flat = pl.pallas_call(
        functools.partial(_upsilon_kernel, eps=float(eps)),
        out_shape=jax.ShapeDtypeStruct((B, 1, L), jnp.float32),
        grid=grid,
        in_specs=[
            pl.BlockSpec((tb, C, tl), lambda b, l: (b, 0, l)),
            pl.BlockSpec((tb, C, tl), lambda b, l: (b, 0, l)),
        ],
        out_specs=pl.BlockSpec((tb, 1, tl), lambda b, l: (b, 0, l)),
        compiler_params=pltpu.CompilerParams(
            dimension_semantics=("parallel", "parallel"),
            vmem_limit_bytes=vmem_limit,
        ),
        cost_estimate=cost,
    )(u3, i3)

    # (B, 1, L) -> (B, 1, H, W)  (free reshape)
    return out_flat.reshape(B, 1, H, W)


def _reference(u, i, eps=EPS):
    nu = jnp.sqrt(jnp.sum(u.astype(jnp.float32) ** 2, axis=1, keepdims=True))
    ni = jnp.sqrt(jnp.sum(i.astype(jnp.float32) ** 2, axis=1, keepdims=True))
    return jnp.maximum(nu * ni, eps)


if __name__ == "__main__":
    key = jax.random.PRNGKey(0)
    ku, ki = jax.random.split(key)
    B, C, H, W = 2, 4, 16, 16
    u = jax.random.normal(ku, (B, C, H, W), dtype=jnp.float32)
    i = jax.random.normal(ki, (B, C, H, W), dtype=jnp.float32)

    out = upsilon_norm(u, i)
    jax.block_until_ready(out)

    ref = _reference(u, i)
    assert out.shape == (B, 1, H, W), out.shape
    assert jnp.allclose(out, ref, atol=1e-5, rtol=1e-5), "mismatch vs reference"

    print("KERNEL_OK")
</pallas_src>

<mosaic_0001>
module attributes {stable_mosaic.version = 11 : i64} {
  func.func @_upsilon_kernel(%arg0: i32, %arg1: i32, %arg2: memref<1x4x256xf32, #tpu.memory_space<vmem>>, %arg3: memref<1x4x256xf32, #tpu.memory_space<vmem>>, %arg4: memref<1x1x256xf32, #tpu.memory_space<vmem>>) attributes {dimension_semantics = [#tpu.dimension_semantics<parallel>, #tpu.dimension_semantics<parallel>], iteration_bounds = array<i64: 2, 1>, scalar_prefetch = 0 : i64, scratch_operands = 0 : i64, tpu.core_type = #tpu.core_type<tc>, window_params = [{transform_indices = @transform_0, window_bounds = array<i64: 1, 4, 256>}, {transform_indices = @transform_1, window_bounds = array<i64: 1, 4, 256>}, {transform_indices = @transform_2, window_bounds = array<i64: 1, 1, 256>}]} {
    %c0 = arith.constant 0 : index
    %c0_0 = arith.constant 0 : index
    %c0_1 = arith.constant 0 : index
    %0 = vector.load %arg2[%c0, %c0_0, %c0_1] : memref<1x4x256xf32, #tpu.memory_space<vmem>>, vector<1x4x256xf32>
    %c0_2 = arith.constant 0 : index
    %c0_3 = arith.constant 0 : index
    %c0_4 = arith.constant 0 : index
    %1 = vector.load %arg3[%c0_2, %c0_3, %c0_4] : memref<1x4x256xf32, #tpu.memory_space<vmem>>, vector<1x4x256xf32>
    %2 = arith.mulf %0, %0 : vector<1x4x256xf32>
    %cst = arith.constant dense<0.000000e+00> : vector<1x256xf32>
    %3 = vector.multi_reduction <add>, %2, %cst [1] : vector<1x4x256xf32> to vector<1x256xf32>
    %4 = vector.shape_cast %3 : vector<1x256xf32> to vector<1x1x256xf32>
    %5 = arith.mulf %1, %1 : vector<1x4x256xf32>
    %cst_5 = arith.constant dense<0.000000e+00> : vector<1x256xf32>
    %6 = vector.multi_reduction <add>, %5, %cst_5 [1] : vector<1x4x256xf32> to vector<1x256xf32>
    %7 = vector.shape_cast %6 : vector<1x256xf32> to vector<1x1x256xf32>
    %8 = math.sqrt %4 : vector<1x1x256xf32>
    %9 = math.sqrt %7 : vector<1x1x256xf32>
    %10 = arith.mulf %8, %9 : vector<1x1x256xf32>
    %cst_6 = arith.constant 9.99999997E-7 : f32
    %11 = vector.broadcast %cst_6 : f32 to vector<1x1x256xf32>
    %12 = arith.maximumf %10, %11 : vector<1x1x256xf32>
    %c0_7 = arith.constant 0 : index
    %c0_8 = arith.constant 0 : index
    %c0_9 = arith.constant 0 : index
    %13 = vector.load %arg4[%c0_7, %c0_8, %c0_9] : memref<1x1x256xf32, #tpu.memory_space<vmem>>, vector<1x1x256xf32>
    tpu.vector_store %arg4[%c0_7, %c0_8, %c0_9], %12 {strides = array<i32>} : memref<1x1x256xf32, #tpu.memory_space<vmem>>, vector<1x1x256xf32>,
    return
  }
  func.func @transform_0(%arg0: i32, %arg1: i32) -> (i32, i32, i32) {
    %c0_i32 = arith.constant 0 : i32
    %c0_i32_0 = arith.constant 0 : i32
    return %arg0, %c0_i32, %arg1 : i32, i32, i32
  }
  func.func @transform_1(%arg0: i32, %arg1: i32) -> (i32, i32, i32) {
    %c0_i32 = arith.constant 0 : i32
    %c0_i32_0 = arith.constant 0 : i32
    return %arg0, %c0_i32, %arg1 : i32, i32, i32
  }
  func.func @transform_2(%arg0: i32, %arg1: i32) -> (i32, i32, i32) {
    %c0_i32 = arith.constant 0 : i32
    %c0_i32_0 = arith.constant 0 : i32
    return %arg0, %c0_i32, %arg1 : i32, i32, i32
  }
}

</mosaic_0001>

<bundles_post_ra>
// kernel: tpu_custom_call.1
= control target key start
LH: loop header
LB: loop body
LE: loop exit
PB: predicated region body
PF: predicated region fallthrough
CT: control target
= control target key end

     0   :  { %7 = vsyncpa [#allocation3], 0  ;;  %s934_s0 = inlined_call_operand.hbm [shape: f32[2,4,256], index: 0, kind: input, shape index: {}]   ;;  %s935_s1 = inlined_call_operand.hbm [shape: f32[2,4,256], index: 1, kind: input, shape index: {}]   ;;  %s936_s2 = inlined_call_operand.hbm [shape: f32[2,1,256], index: 2, kind: output, shape index: {}]  }
   0x1   :  { %9 = vsyncpa [#allocation3 + $0x1], 0 }
   0x2   :  { %10 = vsyncpa [#allocation6], 0 }
   0x3   :  { %12 = vsyncpa [#allocation6 + $0x1], 0 }
   0x4   :  { %13 = vsyncpa [#allocation4], 0 }
   0x5   :  { %15 = vsyncpa [#allocation4 + $0x1], 0  ;;  %s709_s9 = smov 0   ;;  %s711_s10 = smov 0  }
   0x6   :  { %s713_s11 = smov 0   ;;  %s715_s12 = smov 0  }
   0x7   :  { %s717_s13 = smov 0   ;;  %s719_s14 = smov 0  }
   0x8 LB: > { %s444_s15 = sadd.s32 4294967295, %s688_s14   ;;  %s445_s16 = sadd.s32 4294967294, %s688_s14   ;;  %s688_s14 = sphi %s719_s14, %s21_s14   ;;  %s684_s13 = sphi %s717_s13, %s956_s13   ;;  %s680_s12 = sphi %s715_s12, %s955_s12   ;;  %s676_s11 = sphi %s713_s11, %s954_s11   ;;  %s672_s10 = sphi %s711_s10, %s953_s10   ;;  %s668_s9 = sphi %s709_s9, %s952_s9  }
   0x9   : > { %s33_s17 = sadd.s32 1, %s684_s13  ;;  %s42_s18 = sadd.s32 1, %s676_s11 }
   0xa   : > { %p35_p0 = scmp.ge.s32.totalorder %s33_s17, 2  ;;  %p49_p1 = scmp.ne.s32.totalorder %s676_s11, %s672_s10 }
   0xb   : > { %p50_p2 = scmp.eq.s32.totalorder %s688_s14, 0  ;;  %p55_p3 = scmp.ne.s32.totalorder %s672_s10, %s668_s9 }
   0xc   : > { %s958_s17 = smov (%p35_p0, %s33_s17), 0  ;;  %p56_p5 = scmp.eq.s32.totalorder %s444_s15, 0 }
   0xd   : > { %p750_p4 = por %p50_p2, %p49_p1  ;;  %s37_s20 = ssub.s32 %s684_s13, %s958_s17 }
   0xe   : > { %p109_p6 = scmp.eq.s32.totalorder %s444_s15, 1  ;;  %p40_p7 = scmp.eq.s32.totalorder %s37_s20, 0 }
   0xf   : > { %p756_p8 = por %p56_p5, %p55_p3  ;;  %p115_p10 = scmp.eq.s32.totalorder %s445_s16, 1 }
  0x10   : > { %p760_p9 = por %p109_p6, %p49_p1  ;;  %p483_p13 = scmp.lt.s32.totalorder %s688_s14, 2 }
  0x11   : > { %s940_s21 = scalar_select %p756_p8, 1, 0 }
  0x12   : > { %s941_s22 = scalar_select %p760_p9, 1, 0 }
  0x13   : > { %s765_s23 = scalar_select %p40_p7, %s676_s11, %s42_s18  }
  0x14   : > { %p767_p11 = por %p115_p10, %p55_p3  ;;  %s774_s25 = sand.u32 1, %s676_s11  }
  0x15   : > { %s448_s26 = sshll.u32 %s774_s25, 3  ;;  %s463_s27 = sshll.u32 %s684_s13, 7 }
  0x16   : > { %s942_s24 = scalar_select %p767_p11, 1, 0 }
  0x17   : > { %s783_s30 = scalar_lea.hbm %s934_s0, %s463_s27  ;;  %s139_s3 = scalar_lea.vmem [#allocation2], %s448_s26 }
  0x18   : > { %s149_s4 = sshll.u32 %s139_s3, 4  ;;  %p791_p0 = pnand %p483_p13, %p750_p4  ;;  %s787_s4 = int_to_ptr.vmem [resolvable:$true] %s149_s4 }
  0x19   : > { %s136_s6 = scalar_lea.sflag [#allocation3], %s774_s25  ;;  %s542_s7 = scalar_lea.hbm %s783_s30, 128 }
  0x1a   : > { %p543_p3 = scmp.ne.s32.totalorder %s783_s30, %s542_s7  ;;  %p544_p5 = pneg %p791_p0 }
  0x1b   : > { %s547_s16 = scalar_lea.hbm %s934_s0, 256  ;;  %p548_p4 = scmp.lt.u32.totalorder %s783_s30, %s934_s0 }
  0x1c   : > { %p545_p6 = pnand %p544_p5, %p543_p3  ;;  %p549_p10 = scmp.lt.u32.totalorder %s547_s16, %s542_s7 }
  0x1d   : > { %p551_p12 = scmp.lt.u32.totalorder %s542_s7, %s783_s30 }
  0x1e   : > { %p546_p7 = pneg %p545_p6  ;;  %p550_p13 = por %p549_p10, %p548_p4 }
  0x20   : > { %p552_p1 = por %p551_p12, %p550_p13 }
  0x22   : > { %p553_p2 = pnand %p552_p1, %p546_p7 }
  0x24   : > { %556 = shalt.err (!%p553_p2)
}
  0x25   : > { %s557_s20 = scalar_lea.vmem %s787_s4, 128  ;;  %s690_s28 = smov [#allocation2]  }
  0x26   : > { %p558_p3 = scmp.ne.s32.totalorder %s787_s4, %s557_s20  ;;  %s562_s29 = sshll.u32 %s690_s28, 4  ;;  %s563_s29 = int_to_ptr.vmem [resolvable:$false] %s562_s29 }
  0x27   : > { %s564_s3 = scalar_lea.vmem %s563_s29, 256  ;;  %p565_p9 = scmp.lt.s32.totalorder %s787_s4, %s563_s29 }
  0x28   : > { %p560_p6 = pnand %p558_p3, %p544_p5  ;;  %p566_p4 = scmp.lt.s32.totalorder %s564_s3, %s557_s20 }
  0x2a   : > { %p561_p11 = pneg %p560_p6  ;;  %p567_p10 = por %p566_p4, %p565_p9 }
  0x2c   : > { %p568_p12 = pnand %p567_p10, %p561_p11 }
  0x2e   : > { %571 = shalt.err (!%p568_p12)
}
  0x2f   : > { %475 = dma.hbm_to_vmem [thread:$0]  (!%p791_p0), %s783_s30, 128, %s787_s4, %s136_s6  }
  0x30   : > { %p944_p1 = scmp.lt.s32.totalorder %s688_s14, 3  ;;  %p945_p2 = scmp.ge.s32.totalorder %s688_s14, 1 }
  0x31   : > { %s836_s16 = scalar_lea.hbm %s935_s1, %s463_s27  ;;  %s160_s18 = scalar_lea.vmem [#allocation5], %s448_s26 }
  0x32   : > { %p827_p7 = pnand %p945_p2, %p944_p1  ;;  %s170_s19 = sshll.u32 %s160_s18, 4  ;;  %s171_s19 = int_to_ptr.vmem [resolvable:$true] %s170_s19 }
  0x33   : > { %s157_s30 = scalar_lea.sflag [#allocation6], %s774_s25  ;;  %s572_s4 = scalar_lea.hbm %s836_s16, 128 }
  0x34   : > { %s946_s7 = scalar_select %p827_p7, 1, 0 }
  0x35   : > { %p573_p9 = scmp.ne.s32.totalorder %s836_s16, %s572_s4  ;;  %s577_s27 = scalar_lea.hbm %s935_s1, 256 }
  0x36   : > { %p578_p3 = scmp.lt.u32.totalorder %s836_s16, %s935_s1  ;;  %p579_p6 = scmp.lt.u32.totalorder %s577_s27, %s572_s4 }
  0x37   : > { %p575_p11 = pnand %p573_p9, %p544_p5  ;;  %p581_p10 = scmp.lt.u32.totalorder %s572_s4, %s836_s16 }
  0x38   : > { %p580_p4 = por %p579_p6, %p578_p3 }
  0x39   : > { %p576_p13 = pneg %p575_p11 }
  0x3a   : > { %p582_p12 = por %p581_p10, %p580_p4 }
  0x3c   : > { %p583_p1 = pnand %p582_p12, %p576_p13 }
  0x3e   : > { %586 = shalt.err (!%p583_p1)
}
  0x3f   : > { %s587_s25 = scalar_lea.vmem %s171_s19, 128  ;;  %s691_s26 = smov [#allocation5]  }
  0x40   : > { %p588_p2 = scmp.ne.s32.totalorder %s171_s19, %s587_s25  ;;  %s592_s3 = sshll.u32 %s691_s26, 4  ;;  %s593_s3 = int_to_ptr.vmem [resolvable:$false] %s592_s3 }
  0x41   : > { %s594_s8 = scalar_lea.vmem %s593_s3, 256  ;;  %p595_p8 = scmp.lt.s32.totalorder %s171_s19, %s593_s3 }
  0x42   : > { %p590_p9 = pnand %p588_p2, %p544_p5  ;;  %p596_p7 = scmp.lt.s32.totalorder %s594_s8, %s587_s25 }
  0x44   : > { %p591_p11 = pneg %p590_p9  ;;  %p597_p3 = por %p596_p7, %p595_p8 }
  0x46   : > { %p598_p6 = pnand %p597_p3, %p591_p11 }
  0x48   : > { %601 = shalt.err (!%p598_p6)
}
  0x49   : > { %478 = dma.hbm_to_vmem [thread:$0]  (!%p791_p0), %s836_s16, 128, %s171_s19, %s157_s30  }
  0x4a   : > { %p947_p13 = scmp.ne.s32.totalorder %s946_s7, 0 }
  0x4b   : > { %s863_s15 = sand.u32 (!%p947_p13), 1, %s672_s10   ;;  %p948_p5 = scmp.ne.s32.totalorder (!%p947_p13), %s940_s21, 0 }
  0x4c   : > { %179 = sbr.rel (%p947_p13) target bundleno = 144 (0x90), region = 28  ;;  %s455_s18 = sshll.u32 (!%p947_p13), %s863_s15, 3 }
  0x4d   : > { %s182_s4 = scalar_lea.sflag (!%p947_p13), [#allocation3], %s863_s15  ;;  %s185_s6 = scalar_lea.vmem (!%p947_p13), [#allocation2], %s455_s18 }
  0x53   : > { %655 = dma.done.wait (%p948_p5), %s182_s4, 128  }
  0x54   : > { %657 = vsyncadd (%p948_p5), %s182_s4, 4294967168  ;;  %s191_s5 = scalar_lea.sflag [#allocation6], %s863_s15  ;;  %s194_s16 = scalar_lea.vmem [#allocation5], %s455_s18 }
  0x55   : > { %659 = dma.done.wait (%p948_p5), %s191_s5, 128  }
  0x56   : > { %661 = vsyncadd (%p948_p5), %s191_s5, 4294967168  ;;  %v223_v0 = vld [vmem:[%s185_s6] sm:$0xff]  ;;  %v224_v1 = vld [vmem:[%s194_s16] sm:$0xff]  ;;  %vm229_vm0 = vcmask 1043456   ;;  %v300_v34 = vlaneseq  ;;  %v692_v37 = vmov 1966171168  }
  0x57   : > { %v225_v2 = vmul.f32 %v223_v0, %v223_v0  ;;  %v244_v3 = vmul.f32 %v224_v1, %v224_v1  ;;  %v298_v38 = vunpack.c.l.s4 %v692_v37  ;;  %s457_s21 = sshll.u32 %s863_s15, 1  ;;  %s465_s30 = sshll.u32 %s680_s12, 5 }
  0x58   : > { %v301_v54 = vshrl.u32 %v300_v34, 7  ;;  %s219_s7 = scalar_lea.vmem [#allocation7], %s457_s21  ;;  %vm314_vm9 = vcmp.lt.s32.totalorder %v300_v34, 256  ;;  %s887_s28 = scalar_lea.hbm %s936_s2, %s465_s30 }
  0x59   : > { %v227_v4 = vcombine.high %v225_v2, %v225_v2  ;;  %v230_v5 = vsel %vm229_vm0, %v225_v2, 0.0  ;;  %v246_v6 = vcombine.high %v244_v3, %v244_v3  ;;  %v248_v7 = vsel %vm229_vm0, %v244_v3, 0.0  ;;  %s334_s19 = sshll.u32 %s219_s7, 4  ;;  %s318_s29 = scalar_lea.sflag [#allocation4], %s863_s15  ;;  %s882_s19 = int_to_ptr.vmem [resolvable:$true] %s334_s19 }
  0x5a   : > { %v231_v8 = vrot.slane %v230_v5, 4  ;;  %v249_v9 = vrot.slane %v248_v7, 4  ;;  %v299_v58 = vunpack.c.0.s8 %v298_v38  ;;  %s602_s25 = scalar_lea.vmem %s882_s19, 32  ;;  %p949_p0 = scmp.ne.s32.totalorder %s941_s22, 0 }
  0x5b   : > { %v237_v10 = vsel %vm229_vm0, %v227_v4, 0.0  ;;  %v255_v11 = vsel %vm229_vm0, %v246_v6, 0.0  ;;  %p603_p8 = scmp.ne.s32.totalorder %s882_s19, %s602_s25  ;;  %s693_s12 = smov [#allocation7]  }
  0x5c   : > { %v232_v12 = vadd.f32 %v231_v8, %v230_v5  ;;  %v238_v13 = vrot.slane %v237_v10, 4  ;;  %v250_v14 = vadd.f32 %v249_v9, %v248_v7  ;;  %v256_v15 = vrot.slane %v255_v11, 4  ;;  %s606_s26 = sshll.u32 %s693_s12, 4  ;;  %s607_s26 = int_to_ptr.vmem [resolvable:$false] %s606_s26 }
  0x5d   : > { %v302_v63 = vsub.s32 %v299_v58, %v301_v54  ;;  %p604_p7 = pnand %p603_p8, %p949_p0  ;;  %s608_s3 = scalar_lea.vmem %s607_s26, 64 }
  0x5e   : > { %v233_v16 = vrot.slane %v232_v12, 2  ;;  %v239_v17 = vadd.f32 %v238_v13, %v237_v10  ;;  %v251_v18 = vrot.slane %v250_v14, 2  ;;  %v257_v19 = vadd.f32 %v256_v15, %v255_v11  ;;  %p609_p10 = scmp.lt.s32.totalorder %s882_s19, %s607_s26  ;;  %p610_p12 = scmp.lt.s32.totalorder %s608_s3, %s602_s25 }
  0x5f   : > { %p605_p4 = pneg %p604_p7 }
  0x60   : > { %v234_v20 = vadd.f32 %v233_v16, %v232_v12  ;;  %v240_v21 = vrot.slane %v239_v17, 2  ;;  %v252_v22 = vadd.f32 %v251_v18, %v250_v14  ;;  %v258_v23 = vrot.slane %v257_v19, 2  ;;  %p611_p1 = por %p610_p12, %p609_p10 }
  0x62   : > { %v235_v24 = vrot.slane %v234_v20, 1  ;;  %v241_v25 = vadd.f32 %v240_v21, %v239_v17  ;;  %v253_v26 = vrot.slane %v252_v22, 1  ;;  %v259_v27 = vadd.f32 %v258_v23, %v257_v19  ;;  %p612_p2 = pnand %p611_p1, %p605_p4 }
  0x64   : > { %v236_v28 = vadd.f32 %v235_v24, %v234_v20  ;;  %v242_v29 = vrot.slane %v241_v25, 1  ;;  %v254_v30 = vadd.f32 %v253_v26, %v252_v22  ;;  %v260_v31 = vrot.slane %v259_v27, 1 }
  0x66   : > { %v243_v32 = vadd.f32 %v242_v29, %v241_v25  ;;  %v261_v33 = vadd.f32 %v260_v31, %v259_v27  ;;  %534 = vrsqrt.f32 %v236_v28  ;;  %vm264_vm1 = vcmp.eq.f32.partialorder %v236_v28, inf }
  0x67   : > { %536 = vrsqrt.f32 %v254_v30  ;;  %vm266_vm2 = vcmp.eq.f32.partialorder %v236_v28, 0.0  ;;  %v267_v36 = vand.u32 2147483648, %v236_v28  ;;  %vm278_vm4 = vcmp.eq.f32.partialorder %v254_v30, inf }
  0x68   : > { %538 = vrsqrt.f32 %v243_v32  ;;  %vm271_vm3 = vcmp.eq.f32.partialorder %v243_v32, inf  ;;  %v281_v41 = vand.u32 2147483648, %v254_v30  ;;  %vm273_vm5 = vcmp.eq.f32.partialorder %v243_v32, 0.0 }
  0x69   : > { %540 = vrsqrt.f32 %v261_v33  ;;  %v274_v43 = vand.u32 2147483648, %v243_v32  ;;  %vm280_vm6 = vcmp.eq.f32.partialorder %v254_v30, 0.0  ;;  %vm285_vm7 = vcmp.eq.f32.partialorder %v261_v33, inf }
  0x6a   : > { %v288_v48 = vand.u32 2147483648, %v261_v33  ;;  %vm287_vm8 = vcmp.eq.f32.partialorder %v261_v33, 0.0 }
  0x70   : > { %v535_v35 = vpop.eup %534 }
  0x71   : > { %v537_v39 = vpop.eup %536  ;;  %v263_v40 = vmul.f32 %v535_v35, %v236_v28 }
  0x72   : > { %v539_v42 = vpop.eup %538  ;;  %v277_v44 = vmul.f32 %v537_v39, %v254_v30 }
  0x73   : > { %v541_v45 = vpop.eup %540  ;;  %v265_v46 = vsel %vm264_vm1, %v236_v28, %v263_v40  ;;  %v270_v47 = vmul.f32 %v539_v42, %v243_v32 }
  0x74   : > { %v268_v49 = vsel %vm266_vm2, %v267_v36, %v265_v46  ;;  %v279_v50 = vsel %vm278_vm4, %v254_v30, %v277_v44  ;;  %v284_v51 = vmul.f32 %v541_v45, %v261_v33 }
  0x75   : > { %v272_v52 = vsel %vm271_vm3, %v243_v32, %v270_v47  ;;  %v282_v53 = vsel %vm280_vm6, %v281_v41, %v279_v50 }
  0x76   : > { %v275_v55 = vsel %vm273_vm5, %v274_v43, %v272_v52  ;;  %v286_v56 = vsel %vm285_vm7, %v261_v33, %v284_v51  ;;  %v290_v57 = vmul.f32 %v282_v53, %v268_v49 }
  0x77   : > { %v289_v59 = vsel %vm287_vm8, %v288_v48, %v286_v56 }
  0x78   : > { %v291_v60 = vmul.f32 %v289_v59, %v275_v55  ;;  %v292_v61 = vmax.f32 %v290_v57, 1e-06 }
  0x7a   : > { %v293_v62 = vmax.f32 %v291_v60, 1e-06 }
  0x7c   : > { %v296_v0 = vcombine.low %v292_v61, %v293_v62 }
  0x7e   : > { %v303_v1 = vrot.slane %v296_v0, %v302_v63 }
  0x80   : > { %v310_v2 = vrot.slane %v303_v1, %v302_v63 }
  0x82   : > { %316 = vst.msk [vmem:[%s219_s7] sm:$0x3] %vm314_vm9, %v310_v2 }
  0x83   : > { %615 = shalt.err (!%p612_p2)
}
  0x84   : > { %s616_s8 = scalar_lea.hbm %s887_s28, 32  ;;  %s620_s4 = scalar_lea.hbm %s936_s2, 64 }
  0x85   : > { %p617_p9 = scmp.ne.s32.totalorder %s887_s28, %s616_s8  ;;  %p621_p6 = scmp.lt.u32.totalorder %s887_s28, %s936_s2 }
  0x86   : > { %p622_p13 = scmp.lt.u32.totalorder %s620_s4, %s616_s8  ;;  %p624_p8 = scmp.lt.u32.totalorder %s616_s8, %s887_s28 }
  0x87   : > { %p618_p11 = pnand %p617_p9, %p949_p0 }
  0x88   : > { %p623_p5 = por %p622_p13, %p621_p6 }
  0x89   : > { %p619_p3 = pneg %p618_p11 }
  0x8a   : > { %p625_p7 = por %p624_p8, %p623_p5 }
  0x8c   : > { %p626_p4 = pnand %p625_p7, %p619_p3 }
  0x8e   : > { %629 = shalt.err (!%p626_p4)
}
  0x8f   : > { %470 = dma.vmem_to_hbm [thread:$0]  (%p949_p0), %s882_s19, 32, %s887_s28, %s318_s29  }
  0x90 PF: > { %s346_s16 = sand.u32 1, %s668_s9   ;;  %p950_p10 = scmp.ne.s32.totalorder %s942_s24, 0 }
  0x91   : > { %p951_p12 = scmp.ge.s32.totalorder %s688_s14, 2  ;;  %s347_s21 = scalar_lea.sflag [#allocation4], %s346_s16 }
  0x93   : > { %p480_p1 = pnand %p951_p12, %p950_p10 }
  0x95   : > { %663 = dma.done.wait (!%p480_p1), %s347_s21, 32  }
  0x96   : > { %665 = vsyncadd (!%p480_p1), %s347_s21, 4294967264  ;;  %s21_s14 = sadd.s32 1, %s688_s14   ;;  %s952_s9 = smov %s672_s10 }
  0x97   : > { %p18_p2 = scmp.ge.s32.totalorder %s21_s14, 4   ;;  %s953_s10 = smov %s676_s11 }
  0x98   : > { %s954_s11 = smov %s765_s23  ;;  %s955_s12 = smov %s684_s13 }
  0x99   : > { %s956_s13 = smov %s958_s17  ;;  %20 = sbr.rel (!%p18_p2) target bundleno = 8 (0x8), region = 86 }
  0xa0   :  { %352 = vsyncpa [#allocation3], 1 }
  0xa1   :  { %354 = vsyncpa [#allocation3 + $0x1], 1 }
  0xa2   :  { %355 = vsyncpa [#allocation6], 1 }
  0xa3   :  { %357 = vsyncpa [#allocation6 + $0x1], 1 }
  0xa4   :  { %358 = vsyncpa [#allocation4], 1 }
  0xa5   :  { %360 = vsyncpa [#allocation4 + $0x1], 1 }

</bundles_post_ra>
